<compile_context>
chip_gen: v7x
topology: tpu7x:2x2x1
jax: 0.10.0
libtpu: 0.0.40
codegen_flags: <defaults>
</compile_context>

<pallas_src>
import functools

import jax
import jax.numpy as jnp
from jax.experimental import pallas as pl
from jax.experimental.pallas import tpu as pltpu

ALPHA = 1.0
GAMMA = 2.0
IGNORE_LB = 255
EPS = 1e-12


def _tile_loss(logits_ref, label_ref, *, alpha, gamma, ignore_lb,
               s_total, ts, ragged):
    """Per-tile focal loss (1, C, TS) and valid-pixel indicator (1, 1, TS)."""
    s = pl.program_id(1)

    x = logits_ref[...].astype(jnp.float32)        # (1, C, TS)
    lab = label_ref[...]                           # (1, 1, TS) int32

    valid = lab != ignore_lb                       # (1, 1, TS) bool
    if ragged:
        # Mask out-of-bounds lanes of the last spatial block.  Mask x itself
        # (not just the loss) so OOB garbage can't produce NaN * 0.
        col = s * ts + jax.lax.broadcasted_iota(jnp.int32, (1, 1, ts), 2)
        in_bounds = col < s_total
        valid = jnp.logical_and(valid, in_bounds)
        x = jnp.where(in_bounds, x, 0.0)

    # one-hot along the channel (sublane) axis: scatter_(1, label, 1) equiv.
    c_idx = jax.lax.broadcasted_iota(jnp.int32, x.shape, 1)   # (1, C, TS)
    is_tgt = c_idx == lab                                     # (1, C, TS)

    probs = jax.nn.sigmoid(x)
    pt = jnp.where(is_tgt, probs, 1.0 - probs)

    valid_f = valid.astype(jnp.float32)            # (1, 1, TS)
    if alpha == 1.0:
        # alpha_t == one_hot; fold the ignore/bounds mask into the weight.
        weight = jnp.where(is_tgt, valid_f, 0.0)
    else:
        alpha_t = jnp.where(is_tgt, alpha, 1.0 - alpha)
        weight = alpha_t * valid_f

    one_minus_pt = 1.0 - pt
    if gamma == 2.0:
        focal = one_minus_pt * one_minus_pt
    elif float(gamma).is_integer() and 0 <= gamma <= 8:
        focal = jnp.ones_like(one_minus_pt)
        for _ in range(int(gamma)):
            focal = focal * one_minus_pt
    else:
        focal = one_minus_pt ** gamma

    loss = -weight * focal * jnp.log(pt + EPS)     # (1, C, TS)
    return loss, valid_f


def _focal_sum_kernel(logits_ref, label_ref, acc_ref, cnt_ref, *, params):
    """Accumulate per-tile loss / valid-count into per-batch resident blocks."""
    s = pl.program_id(1)

    @pl.when(s == 0)
    def _():
        acc_ref[...] = jnp.zeros_like(acc_ref)
        cnt_ref[...] = jnp.zeros_like(cnt_ref)

    loss, valid_f = _tile_loss(logits_ref, label_ref, **params)
    acc_ref[...] += loss
    cnt_ref[...] += valid_f


def _focal_none_kernel(logits_ref, label_ref, out_ref, *, params):
    """Write the per-tile loss map (reduction='none')."""
    loss, _ = _tile_loss(logits_ref, label_ref, **params)
    out_ref[...] = loss


def _pick_tile(S, C, ts):
    if ts is None:
        # Target ~1 MiB per f32 logits block (double-buffered by the runtime),
        # lane-aligned, capped at 32768 lanes.
        budget = (1 << 20) // (4 * max(C, 1))
        ts = max(512, min(1 << 15, budget))
    if S <= ts:
        return S                          # full-dim block (always legal)
    return max(128, (ts // 128) * 128)    # lane-aligned large tile


def focal_loss(logits, label, *, alpha=ALPHA, gamma=GAMMA,
               reduction='sum', ignore_lb=IGNORE_LB, ts=None):
    """JAX/Pallas equivalent of FocalLoss.forward.

    logits: (N, C, H, W) float
    label:  (N, H, W)    int (ignore_lb marks ignored pixels)
    """
    N, C, H, W = logits.shape
    S = H * W

    # Free reshapes (no transpose, no pad): spatial axis on lanes.
    x = logits.reshape(N, C, S)
    lab = label.reshape(N, 1, S).astype(jnp.int32)

    TS = _pick_tile(S, C, ts)
    num_sb = pl.cdiv(S, TS)
    ragged = (S % TS) != 0

    params = dict(alpha=float(alpha), gamma=float(gamma),
                  ignore_lb=int(ignore_lb), s_total=S, ts=TS, ragged=ragged)

    in_specs = [
        pl.BlockSpec((1, C, TS), lambda n, s: (n, 0, s)),
        pl.BlockSpec((1, 1, TS), lambda n, s: (n, 0, s)),
    ]

    if reduction == 'none':
        out = pl.pallas_call(
            functools.partial(_focal_none_kernel, params=params),
            out_shape=jax.ShapeDtypeStruct((N, C, num_sb * TS), jnp.float32),
            grid_spec=pltpu.PrefetchScalarGridSpec(
                num_scalar_prefetch=0,
                grid=(N, num_sb),
                in_specs=in_specs,
                out_specs=pl.BlockSpec((1, C, TS), lambda n, s: (n, 0, s)),
            ),
            compiler_params=pltpu.CompilerParams(
                dimension_semantics=("parallel", "parallel")),
        )(x, lab)
        return out[:, :, :S].reshape(N, C, H, W)

    acc, cnt = pl.pallas_call(
        functools.partial(_focal_sum_kernel, params=params),
        out_shape=(
            jax.ShapeDtypeStruct((N, C, TS), jnp.float32),
            jax.ShapeDtypeStruct((N, 1, TS), jnp.float32),
        ),
        grid_spec=pltpu.PrefetchScalarGridSpec(
            num_scalar_prefetch=0,
            grid=(N, num_sb),
            in_specs=in_specs,
            # Per-batch resident accumulator blocks: constant along the
            # spatial ("arbitrary") axis, distinct per n ("parallel" axis).
            out_specs=[
                pl.BlockSpec((1, C, TS), lambda n, s: (n, 0, 0)),
                pl.BlockSpec((1, 1, TS), lambda n, s: (n, 0, 0)),
            ],
        ),
        compiler_params=pltpu.CompilerParams(
            dimension_semantics=("parallel", "arbitrary")),
    )(x, lab)

    loss_sum = jnp.sum(acc)
    if reduction == 'mean':
        # Note: all-ignored input gives n_valid == 0 -> NaN/inf, same as the
        # PyTorch reference.
        return loss_sum / jnp.sum(cnt)
    return loss_sum


def _focal_loss_ref(logits, label, *, alpha=ALPHA, gamma=GAMMA,
                    reduction='sum', ignore_lb=IGNORE_LB):
    """Pure-JAX reference mirroring the PyTorch forward."""
    valid = (label != ignore_lb)
    lab = jnp.where(valid, label, 0)
    one_hot = jax.nn.one_hot(lab, logits.shape[1], axis=1, dtype=jnp.float32)
    probs = jax.nn.sigmoid(logits.astype(jnp.float32))
    pt = jnp.where(one_hot == 1.0, probs, 1.0 - probs)
    alpha_t = alpha * one_hot + (1 - alpha) * (1 - one_hot)
    loss = -alpha_t * (1.0 - pt) ** gamma * jnp.log(pt + EPS)
    loss = loss * valid[:, None, :, :].astype(jnp.float32)
    if reduction == 'mean':
        return loss.sum() / jnp.sum(valid).astype(jnp.float32)
    if reduction == 'sum':
        return loss.sum()
    return loss


if __name__ == "__main__":
    key = jax.random.PRNGKey(0)
    k1, k2, k3 = jax.random.split(key, 3)

    N, C, H, W = 2, 4, 16, 16
    logits = jax.random.normal(k1, (N, C, H, W), dtype=jnp.float32)
    label = jax.random.randint(k2, (N, H, W), 0, C, dtype=jnp.int32)
    # sprinkle some ignored pixels
    ignore_mask = jax.random.bernoulli(k3, 0.1, (N, H, W))
    label = jnp.where(ignore_mask, IGNORE_LB, label)

    out = jax.block_until_ready(focal_loss(logits, label, reduction='sum'))
    ref = _focal_loss_ref(logits, label, reduction='sum')
    assert jnp.allclose(out, ref, rtol=1e-5, atol=1e-5), (out, ref)

    out_m = jax.block_until_ready(focal_loss(logits, label, reduction='mean'))
    ref_m = _focal_loss_ref(logits, label, reduction='mean')
    assert jnp.allclose(out_m, ref_m, rtol=1e-5, atol=1e-5), (out_m, ref_m)

    out_n = jax.block_until_ready(focal_loss(logits, label, reduction='none'))
    ref_n = _focal_loss_ref(logits, label, reduction='none')
    assert jnp.allclose(out_n, ref_n, rtol=1e-5, atol=1e-5)

    # Exercise the ragged-tail (masked last tile) path.
    H2, W2 = 10, 15     # S = 150, forced TS = 128 -> ragged last block
    logits2 = jax.random.normal(k1, (N, C, H2, W2), dtype=jnp.float32)
    label2 = jax.random.randint(k2, (N, H2, W2), 0, C, dtype=jnp.int32)
    out2 = jax.block_until_ready(
        focal_loss(logits2, label2, reduction='sum', ts=128))
    ref2 = _focal_loss_ref(logits2, label2, reduction='sum')
    assert jnp.allclose(out2, ref2, rtol=1e-5, atol=1e-5), (out2, ref2)

    print("KERNEL_OK")
</pallas_src>

<mosaic_0001>
module attributes {stable_mosaic.version = 11 : i64} {
  func.func @_focal_sum_kernel(%arg0: i32, %arg1: i32, %arg2: memref<1x4x256xf32, #tpu.memory_space<vmem>>, %arg3: memref<1x1x256xi32, #tpu.memory_space<vmem>>, %arg4: memref<1x4x256xf32, #tpu.memory_space<vmem>>, %arg5: memref<1x1x256xf32, #tpu.memory_space<vmem>>) attributes {dimension_semantics = [#tpu.dimension_semantics<parallel>, #tpu.dimension_semantics<arbitrary>], iteration_bounds = array<i64: 2, 1>, scalar_prefetch = 0 : i64, scratch_operands = 0 : i64, tpu.core_type = #tpu.core_type<tc>, window_params = [{transform_indices = @transform_0, window_bounds = array<i64: 1, 4, 256>}, {transform_indices = @transform_1, window_bounds = array<i64: 1, 1, 256>}, {transform_indices = @transform_2, window_bounds = array<i64: 1, 4, 256>}, {transform_indices = @transform_3, window_bounds = array<i64: 1, 1, 256>}]} {
    %c0_i32 = arith.constant 0 : i32
    %0 = arith.cmpi eq, %arg1, %c0_i32 : i32
    %1 = arith.extui %0 : i1 to i32
    %c0_i32_0 = arith.constant 0 : i32
    %2 = arith.cmpi ne, %1, %c0_i32_0 : i32
    scf.if %2 {
      %cst_23 = arith.constant 0.000000e+00 : f32
      %40 = vector.broadcast %cst_23 : f32 to vector<1x4x256xf32>
      %c0_24 = arith.constant 0 : index
      %c0_25 = arith.constant 0 : index
      %c0_26 = arith.constant 0 : index
      %41 = vector.load %arg4[%c0_24, %c0_25, %c0_26] : memref<1x4x256xf32, #tpu.memory_space<vmem>>, vector<1x4x256xf32>
      tpu.vector_store %arg4[%c0_24, %c0_25, %c0_26], %40 {strides = array<i32>} : memref<1x4x256xf32, #tpu.memory_space<vmem>>, vector<1x4x256xf32>,
      %cst_27 = arith.constant 0.000000e+00 : f32
      %42 = vector.broadcast %cst_27 : f32 to vector<1x1x256xf32>
      %c0_28 = arith.constant 0 : index
      %c0_29 = arith.constant 0 : index
      %c0_30 = arith.constant 0 : index
      %43 = vector.load %arg5[%c0_28, %c0_29, %c0_30] : memref<1x1x256xf32, #tpu.memory_space<vmem>>, vector<1x1x256xf32>
      tpu.vector_store %arg5[%c0_28, %c0_29, %c0_30], %42 {strides = array<i32>} : memref<1x1x256xf32, #tpu.memory_space<vmem>>, vector<1x1x256xf32>,
    } else {
    }
    %c0 = arith.constant 0 : index
    %c0_1 = arith.constant 0 : index
    %c0_2 = arith.constant 0 : index
    %3 = vector.load %arg2[%c0, %c0_1, %c0_2] : memref<1x4x256xf32, #tpu.memory_space<vmem>>, vector<1x4x256xf32>
    %c0_3 = arith.constant 0 : index
    %c0_4 = arith.constant 0 : index
    %c0_5 = arith.constant 0 : index
    %4 = vector.load %arg3[%c0_3, %c0_4, %c0_5] : memref<1x1x256xi32, #tpu.memory_space<vmem>>, vector<1x1x256xi32>
    %c255_i32 = arith.constant 255 : i32
    %5 = vector.broadcast %c255_i32 : i32 to vector<1x1x256xi32>
    %6 = arith.cmpi ne, %4, %5 : vector<1x1x256xi32>
    %7 = tpu.iota {dimensions = array<i32: 1>} : vector<1x4x256xi32>
    %8 = vector.broadcast %4 : vector<1x1x256xi32> to vector<1x4x256xi32>
    %9 = arith.cmpi eq, %7, %8 : vector<1x4x256xi32>
    %10 = arith.negf %3 : vector<1x4x256xf32>
    %11 = math.exp %10 : vector<1x4x256xf32>
    %cst = arith.constant 1.000000e+00 : f32
    %12 = vector.broadcast %cst : f32 to vector<1x4x256xf32>
    %13 = arith.addf %12, %11 : vector<1x4x256xf32>
    %14 = arith.divf %12, %13 : vector<1x4x256xf32>
    %cst_6 = arith.constant 1.000000e+00 : f32
    %15 = vector.broadcast %cst_6 : f32 to vector<1x4x256xf32>
    %16 = arith.subf %15, %14 : vector<1x4x256xf32>
    %17 = arith.select %9, %14, %16 : vector<1x4x256xi1>, vector<1x4x256xf32>
    %18 = arith.extui %6 : vector<1x1x256xi1> to vector<1x1x256xi32>
    %19 = arith.sitofp %18 : vector<1x1x256xi32> to vector<1x1x256xf32>
    %cst_7 = arith.constant 0.000000e+00 : f32
    %20 = vector.shape_cast %19 : vector<1x1x256xf32> to vector<1x1x256xf32>
    %21 = vector.broadcast %20 : vector<1x1x256xf32> to vector<1x4x256xf32>
    %22 = vector.broadcast %cst_7 : f32 to vector<1x4x256xf32>
    %23 = arith.select %9, %21, %22 : vector<1x4x256xi1>, vector<1x4x256xf32>
    %cst_8 = arith.constant 1.000000e+00 : f32
    %24 = vector.broadcast %cst_8 : f32 to vector<1x4x256xf32>
    %25 = arith.subf %24, %17 : vector<1x4x256xf32>
    %26 = arith.mulf %25, %25 : vector<1x4x256xf32>
    %cst_9 = arith.constant 0.000000e+00 : f32
    %27 = vector.broadcast %cst_9 : f32 to vector<1x4x256xf32>
    %28 = arith.subf %27, %23 : vector<1x4x256xf32>
    %29 = arith.mulf %28, %26 : vector<1x4x256xf32>
    %cst_10 = arith.constant 9.99999996E-13 : f32
    %30 = vector.broadcast %cst_10 : f32 to vector<1x4x256xf32>
    %31 = arith.addf %17, %30 : vector<1x4x256xf32>
    %32 = math.log %31 : vector<1x4x256xf32>
    %33 = arith.mulf %29, %32 : vector<1x4x256xf32>
    %c0_11 = arith.constant 0 : index
    %c0_12 = arith.constant 0 : index
    %c0_13 = arith.constant 0 : index
    %34 = vector.load %arg4[%c0_11, %c0_12, %c0_13] : memref<1x4x256xf32, #tpu.memory_space<vmem>>, vector<1x4x256xf32>
    %35 = arith.addf %34, %33 : vector<1x4x256xf32>
    %c0_14 = arith.constant 0 : index
    %c0_15 = arith.constant 0 : index
    %c0_16 = arith.constant 0 : index
    %36 = vector.load %arg4[%c0_14, %c0_15, %c0_16] : memref<1x4x256xf32, #tpu.memory_space<vmem>>, vector<1x4x256xf32>
    tpu.vector_store %arg4[%c0_14, %c0_15, %c0_16], %35 {strides = array<i32>} : memref<1x4x256xf32, #tpu.memory_space<vmem>>, vector<1x4x256xf32>,
    %c0_17 = arith.constant 0 : index
    %c0_18 = arith.constant 0 : index
    %c0_19 = arith.constant 0 : index
    %37 = vector.load %arg5[%c0_17, %c0_18, %c0_19] : memref<1x1x256xf32, #tpu.memory_space<vmem>>, vector<1x1x256xf32>
    %38 = arith.addf %37, %19 : vector<1x1x256xf32>
    %c0_20 = arith.constant 0 : index
    %c0_21 = arith.constant 0 : index
    %c0_22 = arith.constant 0 : index
    %39 = vector.load %arg5[%c0_20, %c0_21, %c0_22] : memref<1x1x256xf32, #tpu.memory_space<vmem>>, vector<1x1x256xf32>
    tpu.vector_store %arg5[%c0_20, %c0_21, %c0_22], %38 {strides = array<i32>} : memref<1x1x256xf32, #tpu.memory_space<vmem>>, vector<1x1x256xf32>,
    return
  }
  func.func @transform_0(%arg0: i32, %arg1: i32) -> (i32, i32, i32) {
    %c0_i32 = arith.constant 0 : i32
    %c0_i32_0 = arith.constant 0 : i32
    return %arg0, %c0_i32, %arg1 : i32, i32, i32
  }
  func.func @transform_1(%arg0: i32, %arg1: i32) -> (i32, i32, i32) {
    %c0_i32 = arith.constant 0 : i32
    %c0_i32_0 = arith.constant 0 : i32
    return %arg0, %c0_i32, %arg1 : i32, i32, i32
  }
  func.func @transform_2(%arg0: i32, %arg1: i32) -> (i32, i32, i32) {
    %c0_i32 = arith.constant 0 : i32
    %c0_i32_0 = arith.constant 0 : i32
    %c0_i32_1 = arith.constant 0 : i32
    return %arg0, %c0_i32, %c0_i32_0 : i32, i32, i32
  }
  func.func @transform_3(%arg0: i32, %arg1: i32) -> (i32, i32, i32) {
    %c0_i32 = arith.constant 0 : i32
    %c0_i32_0 = arith.constant 0 : i32
    %c0_i32_1 = arith.constant 0 : i32
    return %arg0, %c0_i32, %c0_i32_0 : i32, i32, i32
  }
}

</mosaic_0001>

<bundles_post_ra>
// kernel: tpu_custom_call.1
= control target key start
LH: loop header
LB: loop body
LE: loop exit
PB: predicated region body
PF: predicated region fallthrough
CT: control target
= control target key end

     0   :  { %9 = vsyncpa [#allocation3], 0  ;;  %s1088_s0 = inlined_call_operand.hbm [shape: f32[2,4,256], index: 0, kind: input, shape index: {}]   ;;  %s1089_s1 = inlined_call_operand.hbm [shape: s32[2,1,256], index: 1, kind: input, shape index: {}]   ;;  %s1090_s2 = inlined_call_operand.hbm [shape: f32[2,4,256], index: 2, kind: output, shape index: {0}]   ;;  %s1091_s3 = inlined_call_operand.hbm [shape: f32[2,1,256], index: 3, kind: output, shape index: {1}]  }
   0x1   :  { %11 = vsyncpa [#allocation3 + $0x1], 0 }
   0x2   :  { %12 = vsyncpa [#allocation6], 0 }
   0x3   :  { %14 = vsyncpa [#allocation6 + $0x1], 0 }
   0x4   :  { %15 = vsyncpa [#allocation4], 0 }
   0x5   :  { %17 = vsyncpa [#allocation4 + $0x1], 0 }
   0x6   :  { %18 = vsyncpa [#allocation9], 0 }
   0x7   :  { %20 = vsyncpa [#allocation9 + $0x1], 0  ;;  %s831_s12 = smov 0   ;;  %s833_s13 = smov 0  }
   0x8   :  { %s835_s14 = smov 0   ;;  %s837_s15 = smov 0  }
   0x9   :  { %s839_s16 = smov 0   ;;  %s841_s17 = smov 0  }
   0xa LB: > { %s516_s18 = sadd.s32 4294967295, %s804_s17   ;;  %s517_s19 = sadd.s32 4294967294, %s804_s17   ;;  %s804_s17 = sphi %s841_s17, %s26_s17   ;;  %s800_s16 = sphi %s839_s16, %s1113_s16   ;;  %s796_s15 = sphi %s837_s15, %s1112_s15   ;;  %s792_s14 = sphi %s835_s14, %s1111_s14   ;;  %s788_s13 = sphi %s833_s13, %s1110_s13   ;;  %s784_s12 = sphi %s831_s12, %s1109_s12  }
   0xb   : > { %s38_s20 = sadd.s32 1, %s800_s16  ;;  %s47_s21 = sadd.s32 1, %s792_s14 }
   0xc   : > { %p40_p0 = scmp.ge.s32.totalorder %s38_s20, 2  ;;  %p54_p1 = scmp.ne.s32.totalorder %s792_s14, %s788_s13 }
   0xd   : > { %p55_p2 = scmp.eq.s32.totalorder %s804_s17, 0  ;;  %p60_p3 = scmp.ne.s32.totalorder %s788_s13, %s784_s12 }
   0xe   : > { %s1115_s20 = smov (%p40_p0, %s38_s20), 0  ;;  %p61_p5 = scmp.eq.s32.totalorder %s516_s18, 0 }
   0xf   : > { %p872_p4 = por %p55_p2, %p54_p1  ;;  %s42_s23 = ssub.s32 %s800_s16, %s1115_s20 }
  0x10   : > { %p112_p6 = scmp.eq.s32.totalorder %s516_s18, 1  ;;  %p45_p7 = scmp.eq.s32.totalorder %s42_s23, 0 }
  0x11   : > { %p878_p8 = por %p61_p5, %p60_p3  ;;  %p118_p10 = scmp.eq.s32.totalorder %s517_s19, 1 }
  0x12   : > { %p882_p9 = por %p112_p6, %p54_p1  ;;  %p567_p13 = scmp.lt.s32.totalorder %s804_s17, 2 }
  0x13   : > { %s1095_s24 = scalar_select %p878_p8, 1, 0 }
  0x14   : > { %s1096_s25 = scalar_select %p882_p9, 1, 0 }
  0x15   : > { %s887_s26 = scalar_select %p45_p7, %s792_s14, %s47_s21  }
  0x16   : > { %p889_p11 = por %p118_p10, %p60_p3  ;;  %s896_s28 = sand.u32 1, %s792_s14  }
  0x17   : > { %s520_s29 = sshll.u32 %s896_s28, 3  ;;  %s541_s30 = sshll.u32 %s800_s16, 7 }
  0x18   : > { %s1097_s27 = scalar_select %p889_p11, 1, 0 }
  0x19   : > { %s903_s6 = scalar_lea.hbm %s1088_s0, %s541_s30  ;;  %s168_s7 = scalar_lea.vmem [#allocation2], %s520_s29 }
  0x1a   : > { %s178_s8 = sshll.u32 %s168_s7, 4  ;;  %p909_p0 = pnand %p567_p13, %p872_p4  ;;  %s905_s8 = int_to_ptr.vmem [resolvable:$true] %s178_s8 }
  0x1b   : > { %s165_s10 = scalar_lea.sflag [#allocation3], %s896_s28  ;;  %s626_s11 = scalar_lea.hbm %s903_s6, 128 }
  0x1c   : > { %p627_p3 = scmp.ne.s32.totalorder %s903_s6, %s626_s11  ;;  %p628_p5 = pneg %p909_p0 }
  0x1d   : > { %s631_s21 = scalar_lea.hbm %s1088_s0, 256  ;;  %p632_p4 = scmp.lt.u32.totalorder %s903_s6, %s1088_s0 }
  0x1e   : > { %p629_p6 = pnand %p628_p5, %p627_p3  ;;  %p633_p10 = scmp.lt.u32.totalorder %s631_s21, %s626_s11 }
  0x1f   : > { %p635_p12 = scmp.lt.u32.totalorder %s626_s11, %s903_s6 }
  0x20   : > { %p630_p7 = pneg %p629_p6  ;;  %p634_p13 = por %p633_p10, %p632_p4 }
  0x22   : > { %p636_p1 = por %p635_p12, %p634_p13 }
  0x24   : > { %p637_p2 = pnand %p636_p1, %p630_p7 }
  0x26   : > { %640 = shalt.err (!%p637_p2)
}
  0x27   : > { %s641_s29 = scalar_lea.vmem %s905_s8, 128  ;;  %s806_s30 = smov [#allocation2]  }
  0x28   : > { %p642_p3 = scmp.ne.s32.totalorder %s905_s8, %s641_s29  ;;  %s646_s4 = sshll.u32 %s806_s30, 4  ;;  %s647_s4 = int_to_ptr.vmem [resolvable:$false] %s646_s4 }
  0x29   : > { %s648_s5 = scalar_lea.vmem %s647_s4, 256  ;;  %p649_p9 = scmp.lt.s32.totalorder %s905_s8, %s647_s4 }
  0x2a   : > { %p644_p6 = pnand %p642_p3, %p628_p5  ;;  %p650_p4 = scmp.lt.s32.totalorder %s648_s5, %s641_s29 }
  0x2c   : > { %p645_p11 = pneg %p644_p6  ;;  %p651_p10 = por %p650_p4, %p649_p9 }
  0x2e   : > { %p652_p12 = pnand %p651_p10, %p645_p11 }
  0x30   : > { %655 = shalt.err (!%p652_p12)
}
  0x31   : > { %556 = dma.hbm_to_vmem [thread:$0]  (!%p909_p0), %s903_s6, 128, %s905_s8, %s165_s10  }
  0x32   : > { %p1099_p1 = scmp.lt.s32.totalorder %s804_s17, 3  ;;  %p1100_p2 = scmp.ge.s32.totalorder %s804_s17, 1 }
  0x33   : > { %s523_s11 = sshll.u32 %s896_s28, 1  ;;  %s542_s18 = sshll.u32 %s800_s16, 5 }
  0x34   : > { %p945_p7 = pnand %p1100_p2, %p1099_p1  ;;  %s954_s22 = scalar_lea.hbm %s1089_s1, %s542_s18 }
  0x35   : > { %s189_s23 = scalar_lea.vmem [#allocation5], %s523_s11  ;;  %s186_s6 = scalar_lea.sflag [#allocation6], %s896_s28 }
  0x36   : > { %s1101_s7 = scalar_select %p945_p7, 1, 0 }
  0x37   : > { %s199_s29 = sshll.u32 %s189_s23, 4  ;;  %s656_s8 = scalar_lea.hbm %s954_s22, 32  ;;  %s200_s29 = int_to_ptr.vmem [resolvable:$true] %s199_s29 }
  0x38   : > { %p657_p9 = scmp.ne.s32.totalorder %s954_s22, %s656_s8  ;;  %s661_s4 = scalar_lea.hbm %s1089_s1, 64 }
  0x39   : > { %p662_p3 = scmp.lt.u32.totalorder %s954_s22, %s1089_s1  ;;  %p663_p6 = scmp.lt.u32.totalorder %s661_s4, %s656_s8 }
  0x3a   : > { %p659_p11 = pnand %p657_p9, %p628_p5  ;;  %p665_p10 = scmp.lt.u32.totalorder %s656_s8, %s954_s22 }
  0x3b   : > { %p664_p4 = por %p663_p6, %p662_p3 }
  0x3c   : > { %p660_p13 = pneg %p659_p11 }
  0x3d   : > { %p666_p12 = por %p665_p10, %p664_p4 }
  0x3f   : > { %p667_p1 = pnand %p666_p12, %p660_p13 }
  0x41   : > { %670 = shalt.err (!%p667_p1)
}
  0x42   : > { %s671_s28 = scalar_lea.vmem %s200_s29, 32  ;;  %s807_s11 = smov [#allocation5]  }
  0x43   : > { %p672_p2 = scmp.ne.s32.totalorder %s200_s29, %s671_s28  ;;  %s676_s19 = sshll.u32 %s807_s11, 4  ;;  %s677_s19 = int_to_ptr.vmem [resolvable:$false] %s676_s19 }
  0x44   : > { %s678_s21 = scalar_lea.vmem %s677_s19, 64  ;;  %p679_p8 = scmp.lt.s32.totalorder %s200_s29, %s677_s19 }
  0x45   : > { %p674_p9 = pnand %p672_p2, %p628_p5  ;;  %p680_p7 = scmp.lt.s32.totalorder %s678_s21, %s671_s28 }
  0x47   : > { %p675_p11 = pneg %p674_p9  ;;  %p681_p3 = por %p680_p7, %p679_p8 }
  0x49   : > { %p682_p6 = pnand %p681_p3, %p675_p11 }
  0x4b   : > { %685 = shalt.err (!%p682_p6)
}
  0x4c   : > { %559 = dma.hbm_to_vmem [thread:$0]  (!%p909_p0), %s954_s22, 32, %s200_s29, %s186_s6  }
  0x4d   : > { %p1102_p13 = scmp.ne.s32.totalorder %s1101_s7, 0 }
  0x4e   : > { %s979_s23 = sand.u32 (!%p1102_p13), 1, %s788_s13   ;;  %p1103_p8 = scmp.ne.s32.totalorder (!%p1102_p13), %s1095_s24, 0 }
  0x4f   : > { %208 = sbr.rel (%p1102_p13) target bundleno = 168 (0xa8), region = 28  ;;  %s527_s8 = sshll.u32 (!%p1102_p13), %s979_s23, 3 }
  0x50   : > { %s211_s10 = scalar_lea.sflag (!%p1102_p13), [#allocation3], %s979_s23  ;;  %s214_s30 = scalar_lea.vmem (!%p1102_p13), [#allocation2], %s527_s8 }
  0x56   : > { %767 = dma.done.wait (%p1103_p8), %s211_s10, 128  }
  0x57   : > { %769 = vsyncadd (%p1103_p8), %s211_s10, 4294967168  ;;  %s528_s9 = sshll.u32 %s979_s23, 1  ;;  %s220_s7 = scalar_lea.sflag [#allocation6], %s979_s23 }
  0x58   : > { %s223_s22 = scalar_lea.vmem [#allocation5], %s528_s9 }
  0x59   : > { %771 = dma.done.wait (%p1103_p8), %s220_s7, 32  }
  0x5a   : > { %773 = vsyncadd (%p1103_p8), %s220_s7, 4294967264  ;;  %v263_v0 = vlaneseq  ;;  %s255_s29 = scalar_lea.vmem [#allocation8], %s528_s9  ;;  %v808_v2 = vmov 0.0   ;;  %v269_v3 = vld [vmem:[%s223_s22] sm:$0x3]  ;;  %v268_v4 = vld [vmem:[%s214_s30] sm:$0xff] }
  0x5b   : > { %vm270_vm1 = vcmp.ne.s32.totalorder %v269_v3, 255  ;;  %v531_v5 = vmul.f32 -1.442695, %v268_v4  ;;  %s544_s6 = sshll.u32 %s796_s15, 5  ;;  %s377_s24 = sshll.u32 %s255_s29, 4  ;;  %s1007_s24 = int_to_ptr.vmem [resolvable:$true] %s377_s24 }
  0x5c   : > { %vm995_vm0 = vcmp.lt.s32.totalorder %v263_v0, 256  ;;  %v532_v6 = vsel %vm270_vm1, 1.0, %v808_v2  ;;  %s1005_s18 = scalar_lea.hbm %s1091_s3, %s544_s6  ;;  %s349_s28 = scalar_lea.sflag [#allocation9], %s979_s23 }
  0x5d   : > { %267 = vst.msk [vmem:[%s255_s29] sm:$0x3] %vm995_vm0, %v808_v2  ;;  %618 = vpow2.f32 %v531_v5  ;;  %s686_s11 = scalar_lea.vmem %s1007_s24, 32  ;;  %p1106_p5 = scmp.ne.s32.totalorder %s1096_s25, 0 }
  0x5e   : > { %p687_p0 = scmp.ne.s32.totalorder %s1007_s24, %s686_s11  ;;  %s809_s19 = smov [#allocation8]  }
  0x5f   : > { %s690_s21 = sshll.u32 %s809_s19, 4  ;;  %s691_s21 = int_to_ptr.vmem [resolvable:$false] %s690_s21 }
  0x60   : > { %p688_p7 = pnand %p687_p0, %p1106_p5  ;;  %s692_s10 = scalar_lea.vmem %s691_s21, 64 }
  0x61   : > { %p693_p10 = scmp.lt.s32.totalorder %s1007_s24, %s691_s21  ;;  %p694_p12 = scmp.lt.s32.totalorder %s692_s10, %s686_s11 }
  0x62   : > { %p689_p4 = pneg %p688_p7 }
  0x63   : > { %p695_p1 = por %p694_p12, %p693_p10 }
  0x64   : > { %v336_v7 = vld [vmem:[%s255_s29] sm:$0x3] }
  0x65   : > { %v337_v8 = vadd.f32 %v532_v6, %v336_v7  ;;  %p696_p2 = pnand %p695_p1, %p689_p4 }
  0x67   : > { %342 = vst.msk [vmem:[%s255_s29] sm:$0x3] %vm995_vm0, %v337_v8 }
  0x68   : > { %699 = shalt.err (!%p696_p2)
}
  0x69   : > { %s700_s30 = scalar_lea.hbm %s1005_s18, 32  ;;  %s704_s22 = scalar_lea.hbm %s1091_s3, 64 }
  0x6a   : > { %p701_p9 = scmp.ne.s32.totalorder %s1005_s18, %s700_s30  ;;  %p705_p6 = scmp.lt.u32.totalorder %s1005_s18, %s1091_s3 }
  0x6b   : > { %p706_p13 = scmp.lt.u32.totalorder %s704_s22, %s700_s30  ;;  %p708_p0 = scmp.lt.u32.totalorder %s700_s30, %s1005_s18 }
  0x6c   : > { %p702_p11 = pnand %p701_p9, %p1106_p5 }
  0x6d   : > { %p707_p8 = por %p706_p13, %p705_p6 }
  0x6e   : > { %p703_p3 = pneg %p702_p11 }
  0x6f   : > { %p709_p7 = por %p708_p0, %p707_p8 }
  0x71   : > { %p710_p4 = pnand %p709_p7, %p703_p3 }
  0x73   : > { %713 = shalt.err (!%p710_p4)
}
  0x74   : > { %550 = dma.vmem_to_hbm [thread:$0]  (%p1106_p5), %s1007_s24, 32, %s1005_s18, %s349_s28   ;;  %v619_v9 = vpop.eup %618  ;;  %v272_v10 = vshrl.u32 %v263_v0, 7 }
  0x75   : > { %v286_v11 = vadd.f32 1.0, %v619_v9  ;;  %s543_s24 = sshll.u32 %s796_s15, 7  ;;  %s248_s4 = scalar_lea.vmem [#allocation7], %s527_s8 }
  0x76   : > { %v275_v12 = vsub.s32 0, %v272_v10  ;;  %v279_v13 = vsub.s32 1, %v272_v10  ;;  %s363_s5 = sshll.u32 %s248_s4, 4  ;;  %s1039_s11 = scalar_lea.hbm %s1090_s2, %s543_s24  ;;  %s1041_s5 = int_to_ptr.vmem [resolvable:$true] %s363_s5 }
  0x77   : > { %620 = vrcp.f32 %v286_v11  ;;  %s344_s19 = scalar_lea.sflag [#allocation4], %s979_s23  ;;  %s714_s21 = scalar_lea.vmem %s1041_s5, 128 }
  0x78   : > { %v276_v14 = vrot.slane %v269_v3, %v275_v12  ;;  %v280_v15 = vrot.slane %v269_v3, %v279_v13  ;;  %v304_v21 = vrot.slane %v532_v6, %v275_v12  ;;  %v308_v24 = vrot.slane %v532_v6, %v279_v13  ;;  %p715_p10 = scmp.ne.s32.totalorder %s1041_s5, %s714_s21  ;;  %s810_s15 = smov [#allocation7]  }
  0x79   : > { %s718_s8 = sshll.u32 %s810_s15, 4  ;;  %s719_s8 = int_to_ptr.vmem [resolvable:$false] %s718_s8 }
  0x7a   : > { %vm281_vm2 = vcmp.eq.s32.totalorder %v272_v10, %v276_v14  ;;  %vm282_vm3 = vcmp.eq.s32.totalorder %v272_v10, %v280_v15  ;;  %p716_p12 = pnand %p715_p10, %p1106_p5  ;;  %s720_s10 = scalar_lea.vmem %s719_s8, 256 }
  0x7b   : > { %v311_v27 = vsel %vm281_vm2, %v304_v21, 0.0  ;;  %v312_v29 = vsel %vm282_vm3, %v308_v24, 0.0  ;;  %p721_p2 = scmp.lt.s32.totalorder %s1041_s5, %s719_s8  ;;  %p722_p9 = scmp.lt.s32.totalorder %s720_s10, %s714_s21 }
  0x7c   : > { %v317_v31 = vsub.f32 0.0, %v311_v27  ;;  %v318_v33 = vsub.f32 0.0, %v312_v29  ;;  %p717_p1 = pneg %p716_p12 }
  0x7d   : > { %p723_p11 = por %p722_p9, %p721_p2 }
  0x7f   : > { %p724_p3 = pnand %p723_p11, %p717_p1 }
  0x81   : > { %v621_v16 = vpop.eup %620 }
  0x82   : > { %v289_v17 = vsub.f32 1.0, %v621_v16  ;;  %v291_v18 = vcombine.high %v621_v16, %v621_v16 }
  0x84   : > { %v294_v19 = vcombine.high %v289_v17, %v289_v17  ;;  %v296_v20 = vsel %vm281_vm2, %v621_v16, %v289_v17 }
  0x85   : > { %v321_v22 = vadd.f32 1e-12, %v296_v20  ;;  %v313_v26 = vsub.f32 1.0, %v296_v20 }
  0x86   : > { %v297_v23 = vsel %vm282_vm3, %v291_v18, %v294_v19 }
  0x87   : > { %v322_v25 = vadd.f32 1e-12, %v297_v23  ;;  %622 = vlog2.f32 %v321_v22  ;;  %v314_v28 = vsub.f32 1.0, %v297_v23  ;;  %v315_v30 = vmul.f32 %v313_v26, %v313_v26 }
  0x89   : > { %624 = vlog2.f32 %v322_v25  ;;  %v316_v32 = vmul.f32 %v314_v28, %v314_v28  ;;  %v319_v34 = vmul.f32 %v317_v31, %v315_v30 }
  0x8b   : > { %v320_v36 = vmul.f32 %v318_v33, %v316_v32 }
  0x91   : > { %v623_v35 = vpop.eup %622 }
  0x92   : > { %v324_v37 = vmul.f32 0.6931472, %v623_v35 }
  0x93   : > { %v625_v38 = vpop.eup %624 }
  0x94   : > { %v326_v39 = vmul.f32 0.6931472, %v625_v38  ;;  %v327_v40 = vmul.f32 %v324_v37, %v319_v34 }
  0x96   : > { %v328_v41 = vmul.f32 %v326_v39, %v320_v36 }
  0x98   : > { %v332_v42 = vcombine.low %v327_v40, %v328_v41 }
  0x9a   : > { %335 = vst [vmem:[%s248_s4] sm:$0xff] %v332_v42 }
  0x9b   : > { %727 = shalt.err (!%p724_p3)
}
  0x9c   : > { %s728_s23 = scalar_lea.hbm %s1039_s11, 128  ;;  %s732_s7 = scalar_lea.hbm %s1090_s2, 256 }
  0x9d   : > { %p729_p6 = scmp.ne.s32.totalorder %s1039_s11, %s728_s23  ;;  %p733_p0 = scmp.lt.u32.totalorder %s1039_s11, %s1090_s2 }
  0x9e   : > { %p734_p7 = scmp.lt.u32.totalorder %s732_s7, %s728_s23  ;;  %p736_p10 = scmp.lt.u32.totalorder %s728_s23, %s1039_s11 }
  0x9f   : > { %p730_p13 = pnand %p729_p6, %p1106_p5 }
  0xa0   : > { %p735_p4 = por %p734_p7, %p733_p0 }
  0xa1   : > { %p731_p8 = pneg %p730_p13 }
  0xa2   : > { %p737_p12 = por %p736_p10, %p735_p4 }
  0xa4   : > { %p738_p1 = pnand %p737_p12, %p731_p8 }
  0xa6   : > { %741 = shalt.err (!%p738_p1)
}
  0xa7   : > { %549 = dma.vmem_to_hbm [thread:$0]  (%p1106_p5), %s1041_s5, 128, %s1039_s11, %s344_s19  }
  0xa8 PF: > { %s389_s6 = sand.u32 1, %s784_s12   ;;  %p1107_p2 = scmp.ne.s32.totalorder %s1097_s27, 0 }
  0xa9   : > { %p1108_p9 = scmp.ge.s32.totalorder %s804_s17, 2  ;;  %s390_s24 = scalar_lea.sflag [#allocation4], %s389_s6 }
  0xab   : > { %p561_p11 = pnand %p1108_p9, %p1107_p2 }
  0xad   : > { %775 = dma.done.wait (!%p561_p11), %s390_s24, 128  }
  0xae   : > { %777 = vsyncadd (!%p561_p11), %s390_s24, 4294967168  ;;  %s399_s4 = scalar_lea.sflag [#allocation9], %s389_s6 }
  0xaf   : > { %779 = dma.done.wait (!%p561_p11), %s399_s4, 32  }
  0xb0   : > { %781 = vsyncadd (!%p561_p11), %s399_s4, 4294967264  ;;  %s26_s17 = sadd.s32 1, %s804_s17   ;;  %s1109_s12 = smov %s788_s13 }
  0xb1   : > { %p23_p3 = scmp.ge.s32.totalorder %s26_s17, 4   ;;  %s1110_s13 = smov %s792_s14 }
  0xb2   : > { %s1111_s14 = smov %s887_s26  ;;  %s1112_s15 = smov %s800_s16 }
  0xb3   : > { %s1113_s16 = smov %s1115_s20  ;;  %25 = sbr.rel (!%p23_p3) target bundleno = 10 (0xa), region = 107 }
  0xba   :  { %404 = vsyncpa [#allocation3], 1 }
  0xbb   :  { %406 = vsyncpa [#allocation3 + $0x1], 1 }
  0xbc   :  { %407 = vsyncpa [#allocation6], 1 }
  0xbd   :  { %409 = vsyncpa [#allocation6 + $0x1], 1 }
  0xbe   :  { %410 = vsyncpa [#allocation4], 1 }
  0xbf   :  { %412 = vsyncpa [#allocation4 + $0x1], 1 }
  0xc0   :  { %413 = vsyncpa [#allocation9], 1 }
  0xc1   :  { %415 = vsyncpa [#allocation9 + $0x1], 1 }

</bundles_post_ra>
